<compile_context>
chip_gen: v5e
topology: v5e:2x2
jax: 0.10.0
libtpu: 0.0.40
codegen_flags: <defaults>
</compile_context>

<pallas_src>
import jax
import jax.numpy as jnp
from jax import lax
from jax.experimental import pallas as pl
from jax.experimental.pallas import tpu as pltpu


IN_DIM, H1, H2, OUT_DIM = 42, 20, 10, 7
LANE = 128
TB_CAP = 8192  # sweepable; 8192 keeps double-buffered tiles well under the 32 MiB scoped VMEM default


def mlp_kernel(x_ref, w1_ref, b1_ref, w2_ref, b2_ref, w3_ref, b3_ref, o_ref):
    # x_ref : (TB, 42) f32  natural layout (one contiguous DMA per tile)
    # w*_ref: (out, in) f32  resident in VMEM across grid steps
    # b*_ref: (out, 1)  f32
    # o_ref : (TB, 7)  f32  natural layout
    x = x_ref[...]

    # Linear(42 -> 20): contract x's feature axis -> lane-dense (20, TB) hidden.
    h1 = lax.dot_general(w1_ref[...], x, (((1,), (1,)), ((), ())),
                         preferred_element_type=jnp.float32)
    h1 = jnp.maximum(h1 + b1_ref[...], 0.0)

    # Linear(20 -> 10) + ReLU
    h2 = jnp.dot(w2_ref[...], h1, preferred_element_type=jnp.float32)
    h2 = jnp.maximum(h2 + b2_ref[...], 0.0)

    # Linear(10 -> 7)
    logits = jnp.dot(w3_ref[...], h2, preferred_element_type=jnp.float32) + b3_ref[...]

    # Softmax over the 7 classes (sublane axis); batch stays on the 128-lane axis,
    # so exp / max / sum only touch 7 (of 8) sublanes instead of 128 padded lanes.
    m = jnp.max(logits, axis=0, keepdims=True)
    e = jnp.exp(logits - m)
    probs = e / jnp.sum(e, axis=0, keepdims=True)          # exact normalization

    # Fold the (7, TB) -> (TB, 7) output flip into a tiny MXU matmul with I_7
    # (exact: a single 0/1 term per output), avoiding XLU transposes and any
    # wrapper-side transpose of the output.
    r = lax.broadcasted_iota(jnp.int32, (OUT_DIM, OUT_DIM), 0)
    c = lax.broadcasted_iota(jnp.int32, (OUT_DIM, OUT_DIM), 1)
    eye = (r == c).astype(jnp.float32)
    o_ref[...] = lax.dot_general(probs, eye, (((0,), (0,)), ((), ())),
                                 preferred_element_type=jnp.float32)


def _choose_batch_tile(batch):
    """Lane-multiple tile, capped so the grid has >=2 steps (v7x 2-TC split)."""
    half = -(-batch // 2)                       # ceil(B / 2)
    tb = -(-half // LANE) * LANE                # round up to a lane multiple
    return max(LANE, min(tb, TB_CAP))


def mlp_forward(x, w1, b1, w2, b2, w3, b3):
    """x: (B, 42); w_i: (in, out); b_i: (1, out) or (out,). Returns (B, 7) f32."""
    B = x.shape[0]
    x = x.astype(jnp.float32)

    # Tiny weights: transpose/reshape in the wrapper (negligible HBM traffic).
    w1t = jnp.asarray(w1, jnp.float32).T            # (20, 42)
    w2t = jnp.asarray(w2, jnp.float32).T            # (10, 20)
    w3t = jnp.asarray(w3, jnp.float32).T            # (7, 10)
    b1c = jnp.reshape(b1, (-1, 1)).astype(jnp.float32)  # (20, 1)
    b2c = jnp.reshape(b2, (-1, 1)).astype(jnp.float32)  # (10, 1)
    b3c = jnp.reshape(b3, (-1, 1)).astype(jnp.float32)  # (7, 1)

    tb = _choose_batch_tile(B)
    padded = -(-B // tb) * tb
    if padded != B:
        # Keep the pipelined, lane-dense fast path for ragged batches.
        x = jnp.pad(x, ((0, padded - B), (0, 0)))
    grid = (padded // tb,)

    const2d = lambda shape: pl.BlockSpec(shape, lambda i: (0, 0))

    w_bytes = 4 * (IN_DIM * H1 + H1 * H2 + H2 * OUT_DIM + H1 + H2 + OUT_DIM)
    cost = pl.CostEstimate(
        flops=2 * padded * (IN_DIM * H1 + H1 * H2 + H2 * OUT_DIM + OUT_DIM * OUT_DIM),
        transcendentals=padded * OUT_DIM,                       # exp
        bytes_accessed=padded * (IN_DIM + OUT_DIM) * 4 + w_bytes,
    )

    out = pl.pallas_call(
        mlp_kernel,
        out_shape=jax.ShapeDtypeStruct((padded, OUT_DIM), jnp.float32),
        grid=grid,
        in_specs=[
            pl.BlockSpec((tb, IN_DIM), lambda i: (i, 0)),   # x tile, pipelined
            const2d(w1t.shape), const2d(b1c.shape),         # weights/biases resident
            const2d(w2t.shape), const2d(b2c.shape),
            const2d(w3t.shape), const2d(b3c.shape),
        ],
        out_specs=pl.BlockSpec((tb, OUT_DIM), lambda i: (i, 0)),
        compiler_params=pltpu.CompilerParams(
            dimension_semantics=("parallel",),
            vmem_limit_bytes=48 * 1024 * 1024,   # headroom; stays under v7x's 64 MiB physical
        ),
        cost_estimate=cost,
    )(x, w1t, b1c, w2t, b2c, w3t, b3c)

    return out[:B] if padded != B else out


def init_params(key):
    """Deterministic init matching PyTorch Linear default (U[-1/sqrt(fan_in), 1/sqrt(fan_in)])."""
    dims = [(IN_DIM, H1), (H1, H2), (H2, OUT_DIM)]
    params = []
    for i, (fan_in, fan_out) in enumerate(dims):
        kw, kb = jax.random.split(jax.random.fold_in(key, i))
        bound = 1.0 / jnp.sqrt(fan_in)
        w = jax.random.uniform(kw, (fan_in, fan_out), jnp.float32, -bound, bound)
        b = jax.random.uniform(kb, (1, fan_out), jnp.float32, -bound, bound)
        params += [w, b]
    return params


if __name__ == "__main__":
    key = jax.random.PRNGKey(0)
    kx, kp = jax.random.split(key)

    B = 8
    x = jax.random.normal(kx, (B, 21 * 2), jnp.float32)   # 21 landmarks * 2 coords
    w1, b1, w2, b2, w3, b3 = init_params(kp)

    fwd = jax.jit(mlp_forward)
    out = fwd(x, w1, b1, w2, b2, w3, b3)
    jax.block_until_ready(out)

    # Pure-JAX reference (same forward semantics as the PyTorch module).
    h1 = jnp.maximum(x @ w1 + b1, 0.0)
    h2 = jnp.maximum(h1 @ w2 + b2, 0.0)
    ref = jax.nn.softmax(h2 @ w3 + b3, axis=-1)

    assert out.shape == (B, OUT_DIM)
    assert bool(jnp.all(out >= 0.0))
    assert jnp.allclose(jnp.sum(out, axis=-1), 1.0, atol=1e-3)
    assert jnp.allclose(out, ref, atol=2e-2)

    print("KERNEL_OK")
</pallas_src>

<mosaic_0001>
module attributes {stable_mosaic.version = 11 : i64} {
  func.func @mlp_kernel(%arg0: i32, %arg1: memref<128x42xf32, #tpu.memory_space<vmem>>, %arg2: memref<20x42xf32, #tpu.memory_space<vmem>>, %arg3: memref<20x1xf32, #tpu.memory_space<vmem>>, %arg4: memref<10x20xf32, #tpu.memory_space<vmem>>, %arg5: memref<10x1xf32, #tpu.memory_space<vmem>>, %arg6: memref<7x10xf32, #tpu.memory_space<vmem>>, %arg7: memref<7x1xf32, #tpu.memory_space<vmem>>, %arg8: memref<128x7xf32, #tpu.memory_space<vmem>>) attributes {dimension_semantics = [#tpu.dimension_semantics<parallel>], iteration_bounds = array<i64: 1>, scalar_prefetch = 0 : i64, scratch_operands = 0 : i64, tpu.core_type = #tpu.core_type<tc>, window_params = [{transform_indices = @transform_0, window_bounds = array<i64: 128, 42>}, {pipeline_mode = #tpu.pipeline_mode<synchronous>, transform_indices = @transform_1, window_bounds = array<i64: 20, 42>}, {pipeline_mode = #tpu.pipeline_mode<synchronous>, transform_indices = @transform_2, window_bounds = array<i64: 20, 1>}, {pipeline_mode = #tpu.pipeline_mode<synchronous>, transform_indices = @transform_3, window_bounds = array<i64: 10, 20>}, {pipeline_mode = #tpu.pipeline_mode<synchronous>, transform_indices = @transform_4, window_bounds = array<i64: 10, 1>}, {pipeline_mode = #tpu.pipeline_mode<synchronous>, transform_indices = @transform_5, window_bounds = array<i64: 7, 10>}, {pipeline_mode = #tpu.pipeline_mode<synchronous>, transform_indices = @transform_6, window_bounds = array<i64: 7, 1>}, {transform_indices = @transform_7, window_bounds = array<i64: 128, 7>}]} {
    %c0 = arith.constant 0 : index
    %c0_0 = arith.constant 0 : index
    %0 = vector.load %arg1[%c0, %c0_0] : memref<128x42xf32, #tpu.memory_space<vmem>>, vector<128x42xf32>
    %c0_1 = arith.constant 0 : index
    %c0_2 = arith.constant 0 : index
    %1 = vector.load %arg2[%c0_1, %c0_2] : memref<20x42xf32, #tpu.memory_space<vmem>>, vector<20x42xf32>
    %cst = arith.constant dense<0.000000e+00> : vector<20x128xf32>
    %2 = tpu.matmul %1, %0, %cst {dimension_numbers = #tpu.dot_dimension_numbers<[1], [1], [0], [0], [0, 0, 1, 0], [], []>} : vector<20x42xf32>, vector<128x42xf32>, vector<20x128xf32> -> vector<20x128xf32>
    %c0_3 = arith.constant 0 : index
    %c0_4 = arith.constant 0 : index
    %3 = vector.load %arg3[%c0_3, %c0_4] : memref<20x1xf32, #tpu.memory_space<vmem>>, vector<20x1xf32>
    %4 = vector.broadcast %3 : vector<20x1xf32> to vector<20x128xf32>
    %5 = arith.addf %2, %4 : vector<20x128xf32>
    %cst_5 = arith.constant 0.000000e+00 : f32
    %6 = vector.broadcast %cst_5 : f32 to vector<20x128xf32>
    %7 = arith.maximumf %5, %6 : vector<20x128xf32>
    %c0_6 = arith.constant 0 : index
    %c0_7 = arith.constant 0 : index
    %8 = vector.load %arg4[%c0_6, %c0_7] : memref<10x20xf32, #tpu.memory_space<vmem>>, vector<10x20xf32>
    %cst_8 = arith.constant dense<0.000000e+00> : vector<10x128xf32>
    %9 = tpu.matmul %8, %7, %cst_8 {dimension_numbers = #tpu.dot_dimension_numbers<[1], [0], [0], [1], [0, 0, 1, 1], [], []>} : vector<10x20xf32>, vector<20x128xf32>, vector<10x128xf32> -> vector<10x128xf32>
    %c0_9 = arith.constant 0 : index
    %c0_10 = arith.constant 0 : index
    %10 = vector.load %arg5[%c0_9, %c0_10] : memref<10x1xf32, #tpu.memory_space<vmem>>, vector<10x1xf32>
    %11 = vector.broadcast %10 : vector<10x1xf32> to vector<10x128xf32>
    %12 = arith.addf %9, %11 : vector<10x128xf32>
    %cst_11 = arith.constant 0.000000e+00 : f32
    %13 = vector.broadcast %cst_11 : f32 to vector<10x128xf32>
    %14 = arith.maximumf %12, %13 : vector<10x128xf32>
    %c0_12 = arith.constant 0 : index
    %c0_13 = arith.constant 0 : index
    %15 = vector.load %arg6[%c0_12, %c0_13] : memref<7x10xf32, #tpu.memory_space<vmem>>, vector<7x10xf32>
    %cst_14 = arith.constant dense<0.000000e+00> : vector<7x128xf32>
    %16 = tpu.matmul %15, %14, %cst_14 {dimension_numbers = #tpu.dot_dimension_numbers<[1], [0], [0], [1], [0, 0, 1, 1], [], []>} : vector<7x10xf32>, vector<10x128xf32>, vector<7x128xf32> -> vector<7x128xf32>
    %c0_15 = arith.constant 0 : index
    %c0_16 = arith.constant 0 : index
    %17 = vector.load %arg7[%c0_15, %c0_16] : memref<7x1xf32, #tpu.memory_space<vmem>>, vector<7x1xf32>
    %18 = vector.broadcast %17 : vector<7x1xf32> to vector<7x128xf32>
    %19 = arith.addf %16, %18 : vector<7x128xf32>
    %cst_17 = arith.constant dense<0xFF800000> : vector<128xf32>
    %20 = vector.multi_reduction <maximumf>, %19, %cst_17 [0] : vector<7x128xf32> to vector<128xf32>
    %21 = vector.shape_cast %20 : vector<128xf32> to vector<1x128xf32>
    %22 = vector.broadcast %21 : vector<1x128xf32> to vector<7x128xf32>
    %23 = arith.subf %19, %22 : vector<7x128xf32>
    %24 = math.exp %23 : vector<7x128xf32>
    %cst_18 = arith.constant dense<0.000000e+00> : vector<128xf32>
    %25 = vector.multi_reduction <add>, %24, %cst_18 [0] : vector<7x128xf32> to vector<128xf32>
    %26 = vector.shape_cast %25 : vector<128xf32> to vector<1x128xf32>
    %27 = vector.broadcast %26 : vector<1x128xf32> to vector<7x128xf32>
    %28 = arith.divf %24, %27 : vector<7x128xf32>
    %29 = tpu.iota {dimensions = array<i32: 0>} : vector<7x7xi32>
    %30 = tpu.iota {dimensions = array<i32: 1>} : vector<7x7xi32>
    %31 = arith.cmpi eq, %29, %30 : vector<7x7xi32>
    %32 = arith.extui %31 : vector<7x7xi1> to vector<7x7xi32>
    %33 = arith.sitofp %32 : vector<7x7xi32> to vector<7x7xf32>
    %cst_19 = arith.constant dense<0.000000e+00> : vector<128x7xf32>
    %34 = tpu.matmul %28, %33, %cst_19 {dimension_numbers = #tpu.dot_dimension_numbers<[0], [0], [1], [1], [0, 1, 1, 1], [], []>} : vector<7x128xf32>, vector<7x7xf32>, vector<128x7xf32> -> vector<128x7xf32>
    %c0_20 = arith.constant 0 : index
    %c0_21 = arith.constant 0 : index
    %35 = vector.load %arg8[%c0_20, %c0_21] : memref<128x7xf32, #tpu.memory_space<vmem>>, vector<128x7xf32>
    tpu.vector_store %arg8[%c0_20, %c0_21], %34 {strides = array<i32>} : memref<128x7xf32, #tpu.memory_space<vmem>>, vector<128x7xf32>,
    return
  }
  func.func @transform_0(%arg0: i32) -> (i32, i32) {
    %c0_i32 = arith.constant 0 : i32
    %c0_i32_0 = arith.constant 0 : i32
    return %arg0, %c0_i32 : i32, i32
  }
  func.func @transform_1(%arg0: i32) -> (i32, i32) {
    %c0_i32 = arith.constant 0 : i32
    %c0_i32_0 = arith.constant 0 : i32
    %c0_i32_1 = arith.constant 0 : i32
    return %c0_i32, %c0_i32_0 : i32, i32
  }
  func.func @transform_2(%arg0: i32) -> (i32, i32) {
    %c0_i32 = arith.constant 0 : i32
    %c0_i32_0 = arith.constant 0 : i32
    %c0_i32_1 = arith.constant 0 : i32
    return %c0_i32, %c0_i32_0 : i32, i32
  }
  func.func @transform_3(%arg0: i32) -> (i32, i32) {
    %c0_i32 = arith.constant 0 : i32
    %c0_i32_0 = arith.constant 0 : i32
    %c0_i32_1 = arith.constant 0 : i32
    return %c0_i32, %c0_i32_0 : i32, i32
  }
  func.func @transform_4(%arg0: i32) -> (i32, i32) {
    %c0_i32 = arith.constant 0 : i32
    %c0_i32_0 = arith.constant 0 : i32
    %c0_i32_1 = arith.constant 0 : i32
    return %c0_i32, %c0_i32_0 : i32, i32
  }
  func.func @transform_5(%arg0: i32) -> (i32, i32) {
    %c0_i32 = arith.constant 0 : i32
    %c0_i32_0 = arith.constant 0 : i32
    %c0_i32_1 = arith.constant 0 : i32
    return %c0_i32, %c0_i32_0 : i32, i32
  }
  func.func @transform_6(%arg0: i32) -> (i32, i32) {
    %c0_i32 = arith.constant 0 : i32
    %c0_i32_0 = arith.constant 0 : i32
    %c0_i32_1 = arith.constant 0 : i32
    return %c0_i32, %c0_i32_0 : i32, i32
  }
  func.func @transform_7(%arg0: i32) -> (i32, i32) {
    %c0_i32 = arith.constant 0 : i32
    %c0_i32_0 = arith.constant 0 : i32
    return %arg0, %c0_i32 : i32, i32
  }
}

</mosaic_0001>

<bundles_post_ra>
// kernel: mlp_forward.1
= control target key start
LH: loop header
LB: loop body
LE: loop exit
PB: predicated region body
PF: predicated region fallthrough
CT: control target
= control target key end

     0   :  { %vm63_vm0 = vcmask 343040   ;;  %v496_v13 = vmov 0   ;;  %vm171_vm1 = vcmask 1043456   ;;  %vm164_vm2 = vcmask 162816   ;;  %s725_s0 = inlined_call_operand.vmem [shape: f32[128,42], index: 0, kind: input, shape index: {}]   ;;  %s726_s2 = inlined_call_operand.vmem [shape: f32[20,1], index: 2, kind: input, shape index: {}]   ;;  %s727_s4 = inlined_call_operand.vmem [shape: f32[10,1], index: 4, kind: input, shape index: {}]   ;;  %s728_s1 = inlined_call_operand.vmem [shape: f32[20,42], index: 1, kind: input, shape index: {}]   ;;  %s729_s6 = inlined_call_operand.vmem [shape: f32[7,1], index: 6, kind: input, shape index: {}]   ;;  %s730_s3 = inlined_call_operand.vmem [shape: f32[10,20], index: 3, kind: input, shape index: {}]   ;;  %s731_s5 = inlined_call_operand.vmem [shape: f32[7,10], index: 5, kind: input, shape index: {}]   ;;  %s732_s7 = inlined_call_operand.vmem [shape: f32[128,7], index: 7, kind: output, shape index: {}]  }
   0x1   :  { %v41_v0 = vld [vmem:[%s725_s0 + $0x78] sm:$0xff]  ;;  %v40_v1 = vld [vmem:[%s725_s0 + $0x70] sm:$0xff]  ;;  %v39_v2 = vld [vmem:[%s725_s0 + $0x68] sm:$0xff]  ;;  %490 = vset.pattern.permute.xlu1 %v496_v13  ;;  %489 = vset.pattern.permute.xlu0 %v496_v13  ;;  %vm211_vm3 = vcmask 1041408   ;;  %vm207_vm4 = vcmask 80896   ;;  %vm235_vm5 = vcmask 1046528   ;;  %v268_v63 = vlaneseq }
   0x2   :  { %444 = vmatpush.xpose.msk.msra.mxu0 %vm63_vm0, %v41_v0  ;;  %v38_v3 = vld [vmem:[%s725_s0 + $0x60] sm:$0xff]  ;;  %v37_v4 = vld [vmem:[%s725_s0 + $0x58] sm:$0xff]  ;;  %v36_v5 = vld [vmem:[%s725_s0 + $0x50] sm:$0xff]  ;;  %491 = vset.pattern.permute.xlu2 %v496_v13  ;;  %vm307_vm11 = vcmask 56320  }
   0x3   :  { %v35_v6 = vld [vmem:[%s725_s0 + $0x48] sm:$0xff]  ;;  %v34_v7 = vld [vmem:[%s725_s0 + $0x40] sm:$0xff]  ;;  %v33_v8 = vld [vmem:[%s725_s0 + $0x38] sm:$0xff] }
   0x4   :  { %v32_v9 = vld [vmem:[%s725_s0 + $0x30] sm:$0xff]  ;;  %v31_v10 = vld [vmem:[%s725_s0 + $0x28] sm:$0xff]  ;;  %v45_v12 = vld [vmem:[%s726_s2] sm:$0xff] }
   0x5   :  { %v47_v11 = vld [vmem:[%s726_s2 + $0x10] sm:$0xf]  ;;  %v30_v14 = vld [vmem:[%s725_s0 + $0x20] sm:$0xff]  ;;  %50 = vperm.xlu1 %490, %v45_v12   ;;  %v29_v15 = vld [vmem:[%s725_s0 + $0x18] sm:$0xff] }
   0x6   :  { %445 = vmatpush.xpose.msk.msra.mxu0 %vm63_vm0, %v40_v1  ;;  %60 = vperm.xlu0 %489, %v47_v11   ;;  %v46_v16 = vld [vmem:[%s726_s2 + $0x8] sm:$0xff]  ;;  %v28_v18 = vld [vmem:[%s725_s0 + $0x10] sm:$0xff]  ;;  %v26_v20 = vld [vmem:[%s725_s0] sm:$0xff]  ;;  %v269_v1 = vshrl.u32 %v268_v63, 7 }
   0x7   :  { %v153_v17 = vld [vmem:[%s727_s4 + $0x8] sm:$0x3]  ;;  %v42_v21 = vld [vmem:[%s728_s1] sm:$0xff]  ;;  %v44_v23 = vld [vmem:[%s728_s1 + $0x10] sm:$0xf] }
   0x8   :  { %v27_v19 = vld [vmem:[%s725_s0 + $0x8] sm:$0xff]  ;;  %v152_v25 = vld [vmem:[%s727_s4] sm:$0xff] }
   0x9   :  { %v43_v22 = vld [vmem:[%s728_s1 + $0x8] sm:$0xff]  ;;  %156 = vperm.xlu2 %491, %v152_v25   ;;  %v201_v28 = vld [vmem:[%s729_s6] sm:$0x7f] }
   0xa   :  { %446 = vmatpush.xpose.msk.msra.mxu0 %vm63_vm0, %v39_v2  ;;  %v150_v38 = vld [vmem:[%s730_s3] sm:$0xff]  ;;  %v151_v39 = vld [vmem:[%s730_s3 + $0x8] sm:$0x3]  ;;  %v271_v2 = vand.u32 127, %v268_v63 }
   0xb   :  { %v200_v48 = vld [vmem:[%s731_s5] sm:$0x7f] }
   0xc   :  { %vm272_vm6 = vcmp.eq.s32.totalorder %v269_v1, %v271_v2 }
   0xd   :  { %161 = vperm.xlu1 %490, %v153_v17  }
   0xe   :  { %447 = vmatpush.xpose.msk.msra.mxu0 %vm63_vm0, %v38_v3  ;;  %55 = vperm.xlu0 %489, %v46_v16  }
  0x11   :  { %204 = vperm.xlu2 %491, %v201_v28  }
  0x12   :  { %448 = vmatpush.xpose.msk.msra.mxu0 %vm63_vm0, %v37_v4 }
  0x16   :  { %449 = vmatpush.xpose.msk.msra.mxu0 %vm63_vm0, %v36_v5  ;;  %v497_v5 = vmov 0.0  }
  0x1a   :  { %450 = vmatpush.xpose.msk.msra.mxu0 %vm63_vm0, %v35_v6  ;;  %v468_v6 = vsel %vm272_vm6, 1.0, %v497_v5 }
  0x1b   :  { %486 = vmatpush.msk.msra.mxu3 %vm235_vm5, %v468_v6 }
  0x1e   :  { %451 = vmatpush.xpose.msk.msra.mxu0 %vm63_vm0, %v34_v7 }
  0x22   :  { %452 = vmatpush.xpose.msk.msra.mxu0 %vm63_vm0, %v33_v8 }
  0x26   :  { %453 = vmatpush.xpose.msk.msra.mxu0 %vm63_vm0, %v32_v9 }
  0x2a   :  { %454 = vmatpush.xpose.msk.msra.mxu0 %vm63_vm0, %v31_v10 }
  0x2e   :  { %455 = vmatpush.xpose.msk.msra.mxu0 %vm63_vm0, %v30_v14 }
  0x32   :  { %456 = vmatpush.xpose.msk.msra.mxu0 %vm63_vm0, %v29_v15 }
  0x36   :  { %457 = vmatpush.xpose.msk.msra.mxu0 %vm63_vm0, %v28_v18 }
  0x3a   :  { %458 = vmatpush.xpose.msk.msra.mxu0 %vm63_vm0, %v27_v19 }
  0x3e   :  { %459 = vmatpush.xpose.msk.msra.mxu0 %vm63_vm0, %v26_v20 }
  0x41   :  { %460 = vmatmul.msk.f32.vlgmr.msra.gmra.mxu0 %vm63_vm0, %v42_v21 }
  0x49   :  { %461 = vmatmul.msk.f32.gmra.mxu0 %vm63_vm0, %v43_v22 }
  0x51   :  { %462 = vmatmul.msk.f32.gmra.mxu0 %vm63_vm0, %v44_v23 }
  0x63   :  { %v157_v41 = vpop.permute.xlu2 %156 }
  0x6b   :  { %v205_v49 = vpop.permute.xlu2 %204 }
  0x77   :  { %v51_v30 = vpop.permute.xlu1 %50 }
  0x78   :  { %v61_v26 = vpop.permute.xlu0 %60 }
  0x7f   :  { %v162_v42 = vpop.permute.xlu1 %161 }
  0x80   :  { %v56_v29 = vpop.permute.xlu0 %55 }
  0xbe   :  { %v138_v24 = vpop.f32.mrf.mxu0 }
  0xbf   :  { %v139_v34 = vadd.f32 %v138_v24, %v51_v30 }
  0xc1   :  { %v147_v37 = vmax.f32 %v139_v34, 0.0 }
  0xc6   :  { %v141_v27 = vpop.f32.mrf.mxu0 }
  0xc7   :  { %v142_v32 = vadd.f32 %v141_v27, %v56_v29 }
  0xc9   :  { %v148_v36 = vmax.f32 %v142_v32, 0.0 }
  0xce   :  { %v144_v31 = vpop.f32.mrf.mxu0 }
  0xcf   :  { %v145_v33 = vadd.f32 %v144_v31, %v61_v26 }
  0xd1   :  { %v149_v35 = vmax.f32 %v145_v33, 0.0 }
  0xd3   :  { %463 = vmatpush.msk.msra.mxu1 %vm171_vm1, %v149_v35 }
  0xd5   :  { %189 = vmatpush.msra.mxu1 %v148_v36 }
  0xd7   :  { %190 = vmatpush.msra.mxu1 %v147_v37 }
  0xd8   :  { %464 = vmatmul.msk.f32.vlgmr.msra.gmra.mxu1 %vm164_vm2, %v150_v38 }
  0xe0   :  { %465 = vmatmul.msk.f32.gmra.mxu1 %vm164_vm2, %v151_v39 }
 0x155   :  { %v192_v40 = vpop.f32.mrf.mxu1 }
 0x156   :  { %v193_v44 = vadd.f32 %v192_v40, %v157_v41 }
 0x158   :  { %v198_v47 = vmax.f32 %v193_v44, 0.0 }
 0x15d   :  { %v195_v43 = vpop.f32.mrf.mxu1 }
 0x15e   :  { %v196_v45 = vadd.f32 %v195_v43, %v162_v42 }
 0x160   :  { %v199_v46 = vmax.f32 %v196_v45, 0.0 }
 0x162   :  { %466 = vmatpush.msk.msra.mxu2 %vm211_vm3, %v199_v46 }
 0x164   :  { %230 = vmatpush.msra.mxu2 %v198_v47 }
 0x165   :  { %467 = vmatmul.msk.f32.vlgmr.msra.gmra.mxu2 %vm207_vm4, %v200_v48 }
 0x166   :  { %469 = vmatpush.msk.msrb.mxu2 %vm235_vm5, %v468_v6 }
 0x1e8   :  { %v232_v50 = vpop.f32.mrf.mxu2 }
 0x1e9   :  { %v233_v51 = vadd.f32 %v232_v50, %v205_v49 }
 0x1eb   :  { %v236_v52 = vsel %vm235_vm5, %v233_v51, -inf }
 0x1ec   :  { %v237_v53 = vrot.slane %v236_v52, 4 }
 0x1ee   :  { %v238_v54 = vmax.f32 %v236_v52, %v237_v53 }
 0x1f0   :  { %v239_v55 = vrot.slane %v238_v54, 2 }
 0x1f2   :  { %v240_v56 = vmax.f32 %v238_v54, %v239_v55 }
 0x1f4   :  { %v241_v57 = vrot.slane %v240_v56, 1 }
 0x1f6   :  { %v242_v58 = vmax.f32 %v240_v56, %v241_v57 }
 0x1f8   :  { %v243_v59 = vsub.f32 %v233_v51, %v242_v58 }
 0x1fa   :  { %v244_v60 = vmul.f32 1.442695, %v243_v59 }
 0x1fc   :  { %492 = vpow2.f32 %v244_v60 }
 0x202   :  { %v493_v61 = vpop.eup %492 }
 0x203   :  { %v246_v62 = vsel %vm235_vm5, %v493_v61, 0.0 }
 0x204   :  { %v247_v0 = vrot.slane %v246_v62, 4 }
 0x206   :  { %v248_v3 = vadd.f32 %v247_v0, %v246_v62 }
 0x208   :  { %v249_v4 = vrot.slane %v248_v3, 2 }
 0x20a   :  { %v250_v7 = vadd.f32 %v249_v4, %v248_v3 }
 0x20c   :  { %v251_v8 = vrot.slane %v250_v7, 1 }
 0x20e   :  { %v252_v9 = vadd.f32 %v251_v8, %v250_v7 }
 0x210   :  { %494 = vrcp.f32 %v252_v9  ;;  %v264_v13 = vand.u32 2147483648, %v252_v9  ;;  %v262_v15 = vand.u32 2147483647, %v252_v9  ;;  %vm258_vm8 = vweird.f32 %v252_v9 }
 0x212   :  { %v265_v17 = vor.u32 1.1754944e-38, %v264_v13  ;;  %vm263_vm10 = vcmp.eq.f32.partialorder %v262_v15, 8.507059e+37 }
 0x216   :  { %v495_v10 = vpop.eup %494 }
 0x217   :  { %v254_v11 = vmul.f32 %v495_v10, %v252_v9  ;;  %vm259_vm7 = vweird.f32 %v495_v10 }
 0x218   :  { %vm260_vm9 = vmor %vm258_vm8, %vm259_vm7 }
 0x219   :  { %v255_v12 = vsub.f32 1.0, %v254_v11 }
 0x21b   :  { %v256_v14 = vmul.f32 %v495_v10, %v255_v12 }
 0x21d   :  { %v257_v16 = vadd.f32 %v495_v10, %v256_v14 }
 0x21f   :  { %v261_v18 = vsel %vm260_vm9, %v495_v10, %v257_v16 }
 0x220   :  { %v266_v19 = vsel %vm263_vm10, %v265_v17, %v261_v18 }
 0x221   :  { %v267_v20 = vmul.f32 %v493_v61, %v266_v19 }
 0x223   :  { %275 = vxpose.xlu0.b32.start.end [1/1] (short) %v267_v20, 128 }
 0x2c7   :  { %v291_v21 = vpop.trf.xlu0 }
 0x2c8   :  { %470 = vmatmul.msk.f32.vlgmr.msrb.gmra.mxu2 %vm307_vm11, %v291_v21 }
 0x2cf   :  { %v292_v22 = vpop.trf.xlu0 }
 0x2d0   :  { %471 = vmatmul.msk.f32.gmra.mxu2 %vm307_vm11, %v292_v22 }
 0x2d7   :  { %v293_v23 = vpop.trf.xlu0 }
 0x2d8   :  { %472 = vmatmul.msk.f32.gmra.mxu2 %vm307_vm11, %v293_v23 }
 0x2df   :  { %v294_v24 = vpop.trf.xlu0 }
 0x2e0   :  { %473 = vmatmul.msk.f32.gmra.mxu2 %vm307_vm11, %v294_v24 }
 0x2e7   :  { %v295_v25 = vpop.trf.xlu0 }
 0x2e8   :  { %474 = vmatmul.msk.f32.gmra.mxu2 %vm307_vm11, %v295_v25 }
 0x2ef   :  { %v296_v26 = vpop.trf.xlu0 }
 0x2f0   :  { %475 = vmatmul.msk.f32.gmra.mxu2 %vm307_vm11, %v296_v26 }
 0x2f7   :  { %v297_v27 = vpop.trf.xlu0 }
 0x2f8   :  { %476 = vmatmul.msk.f32.gmra.mxu2 %vm307_vm11, %v297_v27 }
 0x2ff   :  { %v298_v28 = vpop.trf.xlu0 }
 0x300   :  { %477 = vmatmul.msk.f32.gmra.mxu2 %vm307_vm11, %v298_v28 }
 0x307   :  { %v299_v29 = vpop.trf.xlu0 }
 0x308   :  { %478 = vmatmul.msk.f32.vlgmr.msra.gmra.mxu3 %vm307_vm11, %v299_v29 }
 0x30f   :  { %v300_v30 = vpop.trf.xlu0 }
 0x310   :  { %479 = vmatmul.msk.f32.gmra.mxu3 %vm307_vm11, %v300_v30 }
 0x317   :  { %v301_v31 = vpop.trf.xlu0 }
 0x318   :  { %480 = vmatmul.msk.f32.gmra.mxu3 %vm307_vm11, %v301_v31 }
 0x31f   :  { %v302_v32 = vpop.trf.xlu0 }
 0x320   :  { %481 = vmatmul.msk.f32.gmra.mxu3 %vm307_vm11, %v302_v32 }
 0x327   :  { %v303_v33 = vpop.trf.xlu0 }
 0x328   :  { %482 = vmatmul.msk.f32.gmra.mxu3 %vm307_vm11, %v303_v33 }
 0x32f   :  { %v304_v34 = vpop.trf.xlu0 }
 0x330   :  { %483 = vmatmul.msk.f32.gmra.mxu3 %vm307_vm11, %v304_v34 }
 0x337   :  { %v305_v35 = vpop.trf.xlu0 }
 0x338   :  { %484 = vmatmul.msk.f32.gmra.mxu3 %vm307_vm11, %v305_v35 }
 0x33f   :  { %v306_v36 = vpop.trf.xlu0 }
 0x340   :  { %485 = vmatmul.msk.f32.gmra.mxu3 %vm307_vm11, %v306_v36 }
 0x34b   :  { %v376_v37 = vpop.f32.mrf.mxu2 }
 0x34c   :  { %424 = vst.msk [vmem:[%s732_s7] sm:$0xff] %vm307_vm11, %v376_v37 }
 0x353   :  { %v379_v38 = vpop.f32.mrf.mxu2 }
 0x354   :  { %425 = vst.msk [vmem:[%s732_s7 + $0x8] sm:$0xff] %vm307_vm11, %v379_v38 }
 0x35b   :  { %v382_v39 = vpop.f32.mrf.mxu2 }
 0x35c   :  { %426 = vst.msk [vmem:[%s732_s7 + $0x10] sm:$0xff] %vm307_vm11, %v382_v39 }
 0x363   :  { %v385_v40 = vpop.f32.mrf.mxu2 }
 0x364   :  { %427 = vst.msk [vmem:[%s732_s7 + $0x18] sm:$0xff] %vm307_vm11, %v385_v40 }
 0x36b   :  { %v388_v41 = vpop.f32.mrf.mxu2 }
 0x36c   :  { %428 = vst.msk [vmem:[%s732_s7 + $0x20] sm:$0xff] %vm307_vm11, %v388_v41 }
 0x373   :  { %v391_v42 = vpop.f32.mrf.mxu2 }
 0x374   :  { %429 = vst.msk [vmem:[%s732_s7 + $0x28] sm:$0xff] %vm307_vm11, %v391_v42 }
 0x37b   :  { %v394_v43 = vpop.f32.mrf.mxu2 }
 0x37c   :  { %430 = vst.msk [vmem:[%s732_s7 + $0x30] sm:$0xff] %vm307_vm11, %v394_v43 }
 0x383   :  { %v397_v44 = vpop.f32.mrf.mxu2 }
 0x384   :  { %431 = vst.msk [vmem:[%s732_s7 + $0x38] sm:$0xff] %vm307_vm11, %v397_v44 }
 0x38b   :  { %v400_v45 = vpop.f32.mrf.mxu3 }
 0x38c   :  { %432 = vst.msk [vmem:[%s732_s7 + $0x40] sm:$0xff] %vm307_vm11, %v400_v45 }
 0x393   :  { %v403_v46 = vpop.f32.mrf.mxu3 }
 0x394   :  { %433 = vst.msk [vmem:[%s732_s7 + $0x48] sm:$0xff] %vm307_vm11, %v403_v46 }
 0x39b   :  { %v406_v47 = vpop.f32.mrf.mxu3 }
 0x39c   :  { %434 = vst.msk [vmem:[%s732_s7 + $0x50] sm:$0xff] %vm307_vm11, %v406_v47 }
 0x3a3   :  { %v409_v48 = vpop.f32.mrf.mxu3 }
 0x3a4   :  { %435 = vst.msk [vmem:[%s732_s7 + $0x58] sm:$0xff] %vm307_vm11, %v409_v48 }
 0x3ab   :  { %v412_v49 = vpop.f32.mrf.mxu3 }
 0x3ac   :  { %436 = vst.msk [vmem:[%s732_s7 + $0x60] sm:$0xff] %vm307_vm11, %v412_v49 }
 0x3b3   :  { %v415_v50 = vpop.f32.mrf.mxu3 }
 0x3b4   :  { %437 = vst.msk [vmem:[%s732_s7 + $0x68] sm:$0xff] %vm307_vm11, %v415_v50 }
 0x3bb   :  { %v418_v51 = vpop.f32.mrf.mxu3 }
 0x3bc   :  { %438 = vst.msk [vmem:[%s732_s7 + $0x70] sm:$0xff] %vm307_vm11, %v418_v51 }
 0x3c3   :  { %v421_v52 = vpop.f32.mrf.mxu3 }
 0x3c4   :  { %439 = vst.msk [vmem:[%s732_s7 + $0x78] sm:$0xff] %vm307_vm11, %v421_v52 }

</bundles_post_ra>
